<compile_context>
chip_gen: v5e
topology: v5e:2x2
jax: 0.10.0
libtpu: 0.0.40
codegen_flags: <defaults>
</compile_context>

<pallas_src>
import functools

import jax
import jax.numpy as jnp
from jax.experimental import pallas as pl
from jax.experimental.pallas import tpu as pltpu


def _round_up(x, m):
    return (x + m - 1) // m * m


def _lane_granularity():
    """256 on v6e/v7x (256x256 MXU faces); 128 on v5e and older / unknown."""
    try:
        kind = jax.devices()[0].device_kind.lower()
    except Exception:
        return 128
    if any(v in kind for v in ("v2", "v3", "v4", "v5")):
        return 128
    return 256


def _pick_tm(batch):
    """Batch tile: big (amortize ~0.35us/step overhead and per-tile weight
    re-DMA) but keep >= 2 grid steps when possible for v7x megacore."""
    for tm in (512, 256, 128):
        if batch >= 2 * tm:
            return tm
    return min(_round_up(max(batch, 1), 8), 256)


# --------------------------------------------------------------------------
# Kernel: grid = (batch_tiles, L).  Weights stream per layer; the activation
# persists in an f32 VMEM scratch across the layer axis.
# --------------------------------------------------------------------------
def _linear_prelu(h_bf16, w_bf16, b, alpha):
    z = jnp.dot(h_bf16, w_bf16, preferred_element_type=jnp.float32)  # MXU
    z = z + b                                     # (tm, d_pad) + (1, d_pad)
    return jnp.where(z > 0, z, alpha * z)         # PReLU epilogue in f32


def _mlp_fused_kernel(x_ref, w_ref, b_ref, a_ref, o_ref, h_ref):
    l = pl.program_id(1)
    last = pl.num_programs(1) - 1
    in_features = x_ref.shape[1]

    @pl.when(l == 0)
    def _():
        # Layer 0 straight from the (feature-unpadded) input: only the real K
        # rows of the weight block are read.
        x = x_ref[...].astype(jnp.bfloat16)
        w0 = w_ref[0, :in_features, :]
        h_ref[...] = _linear_prelu(x, w0, b_ref[0], a_ref[0])

    @pl.when(l != 0)
    def _():
        h = h_ref[...].astype(jnp.bfloat16)       # bf16 MXU operand, f32 accum
        h_ref[...] = _linear_prelu(h, w_ref[0], b_ref[0], a_ref[0])

    # Dropout (eval) == identity.
    # TODO(synk): training-mode dropout via pltpu.prng_seed / prng_random_bits.

    @pl.when(l == last)
    def _():
        o_ref[...] = h_ref[:, :o_ref.shape[1]].astype(o_ref.dtype)


# --------------------------------------------------------------------------
# Parameter init (mirrors nn.Linear / nn.PReLU defaults) and packing.
# --------------------------------------------------------------------------
def init_mlp_params(key, layer_sizes):
    """nn.Linear: U(-1/sqrt(fan_in), +1/sqrt(fan_in)); nn.PReLU: alpha=0.25."""
    params = []
    for i in range(len(layer_sizes) - 1):
        fan_in, fan_out = layer_sizes[i], layer_sizes[i + 1]
        key, kw, kb = jax.random.split(key, 3)
        bound = 1.0 / float(fan_in) ** 0.5
        w = jax.random.uniform(kw, (fan_out, fan_in), jnp.float32, -bound, bound)
        b = jax.random.uniform(kb, (fan_out,), jnp.float32, -bound, bound)
        params.append({
            "w_t": w.T,                           # (In, Out):  y = x @ W^T + b
            "b": b.reshape(1, fan_out),
            "alpha": jnp.full((1, fan_out), 0.25, jnp.float32),
        })
    return params


def pack_params(params, layer_sizes):
    """Zero-pad every layer to a common lane-dense width and stack.

    Padded output channels have bias=0 and alpha=0, so they remain exactly 0
    through every layer -> zero padding is semantics-preserving.
    """
    max_dim = max(layer_sizes)
    g = 128 if max_dim <= 128 else _lane_granularity()
    d_pad = _round_up(max_dim, g)
    L = len(params)
    w = jnp.zeros((L, d_pad, d_pad), jnp.float32)
    b = jnp.zeros((L, 1, d_pad), jnp.float32)
    a = jnp.zeros((L, 1, d_pad), jnp.float32)
    for l, layer in enumerate(params):
        fin, fout = layer["w_t"].shape
        w = w.at[l, :fin, :fout].set(layer["w_t"])
        b = b.at[l, :, :fout].set(layer["b"])
        a = a.at[l, :, :fout].set(layer["alpha"])
    return {
        "w": w.astype(jnp.bfloat16),   # bf16 MXU operand -> half the weight DMA
        "b": b,                        # f32 epilogue operands
        "alpha": a,
        "d_pad": d_pad,
        "in_features": layer_sizes[0],
        "out_features": layer_sizes[-1],
    }


# --------------------------------------------------------------------------
# Wrapper: one pallas_call for the whole MLP.
# --------------------------------------------------------------------------
@functools.partial(jax.jit,
                   static_argnames=("d_pad", "in_features", "out_features"))
def _mlp_forward_padded(x, w, b, alpha, *, d_pad, in_features, out_features):
    B = x.shape[0]
    L = w.shape[0]
    out_pad = _round_up(out_features, 128)

    tm = _pick_tm(B)
    b_pad = _round_up(B, tm)
    x_in = x if b_pad == B else jnp.pad(x, ((0, b_pad - B), (0, 0)))
    n_bt = b_pad // tm

    # Explicit VMEM budget: double-buffered weight/bias/alpha/x/out blocks plus
    # the activation scratch, with headroom; capped to fit v7x (64 MiB phys).
    vmem_need = (2 * d_pad * d_pad * 2           # weight block (bf16), 2 bufs
                 + 2 * 2 * 2 * d_pad * 4         # bias + alpha, 2 bufs each
                 + 2 * tm * in_features * 4      # x tile, 2 bufs (f32)
                 + 2 * tm * out_pad * 4          # out tile, 2 bufs (f32)
                 + tm * d_pad * 4)               # h scratch
    vmem_limit = int(min(max(2 * vmem_need + (4 << 20), 16 << 20), 48 << 20))

    cost = pl.CostEstimate(
        flops=2 * b_pad * d_pad * d_pad * L,
        transcendentals=0,
        bytes_accessed=(x_in.size * x_in.dtype.itemsize
                        + n_bt * (w.size * 2 + b.size * 4 + alpha.size * 4)
                        + b_pad * out_pad * 4))

    out = pl.pallas_call(
        _mlp_fused_kernel,
        out_shape=jax.ShapeDtypeStruct((b_pad, out_pad), jnp.float32),
        grid_spec=pltpu.PrefetchScalarGridSpec(
            num_scalar_prefetch=0,
            grid=(n_bt, L),
            in_specs=[
                pl.BlockSpec((tm, in_features), lambda i, l: (i, 0)),     # x
                pl.BlockSpec((1, d_pad, d_pad), lambda i, l: (l, 0, 0)),  # W_l
                pl.BlockSpec((1, 1, d_pad), lambda i, l: (l, 0, 0)),      # b_l
                pl.BlockSpec((1, 1, d_pad), lambda i, l: (l, 0, 0)),      # a_l
            ],
            out_specs=pl.BlockSpec((tm, out_pad), lambda i, l: (i, 0)),
            scratch_shapes=[pltpu.VMEM((tm, d_pad), jnp.float32)],
        ),
        compiler_params=pltpu.CompilerParams(
            dimension_semantics=("parallel", "arbitrary"),
            vmem_limit_bytes=vmem_limit),
        cost_estimate=cost,
    )(x_in, w, b, alpha)

    return out[:B, :out_features]


def mlp_forward(x, packed):
    return _mlp_forward_padded(
        x, packed["w"], packed["b"], packed["alpha"],
        d_pad=packed["d_pad"],
        in_features=packed["in_features"],
        out_features=packed["out_features"])


# --------------------------------------------------------------------------
# Pure-JAX references.
# --------------------------------------------------------------------------
def _reference_forward_f32(x, params):
    """True (eval-mode) PyTorch semantics in full f32."""
    h = x
    for layer in params:
        z = jnp.dot(h, layer["w_t"], precision=jax.lax.Precision.HIGHEST)
        z = z + layer["b"]
        h = jnp.where(z > 0, z, layer["alpha"] * z)
    return h


def _reference_forward_bf16(x, params):
    """Mirrors the kernel's bf16 MXU operand rounding / f32 accumulation."""
    h = x
    for layer in params:
        hb = h.astype(jnp.bfloat16).astype(jnp.float32)
        wb = layer["w_t"].astype(jnp.bfloat16).astype(jnp.float32)
        z = hb @ wb + layer["b"]
        h = jnp.where(z > 0, z, layer["alpha"] * z)
    return h


if __name__ == "__main__":
    layer_sizes = [32, 64, 48, 16]
    batch = 8

    key = jax.random.PRNGKey(0)
    key, kx = jax.random.split(key)
    x = jax.random.normal(kx, (batch, layer_sizes[0]), jnp.float32)
    params = init_mlp_params(key, layer_sizes)
    packed = pack_params(params, layer_sizes)

    out = jax.block_until_ready(mlp_forward(x, packed))
    assert out.shape == (batch, layer_sizes[-1]), out.shape
    assert not bool(jnp.any(jnp.isnan(out))), "NaNs in kernel output"

    ref_bf16 = _reference_forward_bf16(x, params)
    ref_f32 = _reference_forward_f32(x, params)
    assert jnp.allclose(out, ref_bf16, atol=1e-2, rtol=1e-2), \
        "mismatch vs bf16-mirrored reference"
    assert jnp.allclose(out, ref_f32, atol=5e-2, rtol=5e-2), \
        "mismatch vs f32 reference"

    print("KERNEL_OK")
</pallas_src>

<mosaic_0001>
module attributes {stable_mosaic.version = 11 : i64} {
  func.func @_mlp_fused_kernel(%arg0: i32, %arg1: i32, %arg2: memref<8x32xf32, #tpu.memory_space<vmem>>, %arg3: memref<1x128x128xbf16, #tpu.memory_space<vmem>>, %arg4: memref<1x1x128xf32, #tpu.memory_space<vmem>>, %arg5: memref<1x1x128xf32, #tpu.memory_space<vmem>>, %arg6: memref<8x128xf32, #tpu.memory_space<vmem>>, %arg7: memref<8x128xf32, #tpu.memory_space<vmem>>) attributes {dimension_semantics = [#tpu.dimension_semantics<parallel>, #tpu.dimension_semantics<arbitrary>], iteration_bounds = array<i64: 1, 3>, scalar_prefetch = 0 : i64, scratch_operands = 1 : i64, tpu.core_type = #tpu.core_type<tc>, window_params = [{transform_indices = @transform_0, window_bounds = array<i64: 8, 32>}, {transform_indices = @transform_1, window_bounds = array<i64: 1, 128, 128>}, {transform_indices = @transform_2, window_bounds = array<i64: 1, 1, 128>}, {transform_indices = @transform_3, window_bounds = array<i64: 1, 1, 128>}, {transform_indices = @transform_4, window_bounds = array<i64: 8, 128>}]} {
    %c0_i32 = arith.constant 0 : i32
    %0 = arith.cmpi eq, %arg1, %c0_i32 : i32
    %1 = arith.extui %0 : i1 to i32
    %c0_i32_0 = arith.constant 0 : i32
    %2 = arith.cmpi ne, %1, %c0_i32_0 : i32
    scf.if %2 {
      %c0 = arith.constant 0 : index
      %c0_4 = arith.constant 0 : index
      %9 = vector.load %arg2[%c0, %c0_4] : memref<8x32xf32, #tpu.memory_space<vmem>>, vector<8x32xf32>
      %10 = arith.truncf %9 : vector<8x32xf32> to vector<8x32xbf16>
      %c0_5 = arith.constant 0 : index
      %c0_6 = arith.constant 0 : index
      %c0_7 = arith.constant 0 : index
      %11 = vector.load %arg3[%c0_5, %c0_6, %c0_7] : memref<1x128x128xbf16, #tpu.memory_space<vmem>>, vector<1x32x128xbf16>
      %12 = vector.shape_cast %11 : vector<1x32x128xbf16> to vector<32x128xbf16>
      %c0_8 = arith.constant 0 : index
      %c0_9 = arith.constant 0 : index
      %c0_10 = arith.constant 0 : index
      %13 = vector.load %arg4[%c0_8, %c0_9, %c0_10] : memref<1x1x128xf32, #tpu.memory_space<vmem>>, vector<1x1x128xf32>
      %14 = vector.shape_cast %13 : vector<1x1x128xf32> to vector<1x128xf32>
      %c0_11 = arith.constant 0 : index
      %c0_12 = arith.constant 0 : index
      %c0_13 = arith.constant 0 : index
      %15 = vector.load %arg5[%c0_11, %c0_12, %c0_13] : memref<1x1x128xf32, #tpu.memory_space<vmem>>, vector<1x1x128xf32>
      %16 = vector.shape_cast %15 : vector<1x1x128xf32> to vector<1x128xf32>
      %cst = arith.constant dense<0.000000e+00> : vector<8x128xf32>
      %17 = tpu.matmul %10, %12, %cst {dimension_numbers = #tpu.dot_dimension_numbers<[1], [0], [0], [1], [0, 0, 1, 1], [], []>} : vector<8x32xbf16>, vector<32x128xbf16>, vector<8x128xf32> -> vector<8x128xf32>
      %18 = vector.broadcast %14 : vector<1x128xf32> to vector<8x128xf32>
      %19 = arith.addf %17, %18 : vector<8x128xf32>
      %cst_14 = arith.constant 0.000000e+00 : f32
      %20 = vector.broadcast %cst_14 : f32 to vector<8x128xf32>
      %21 = arith.cmpf ogt, %19, %20 : vector<8x128xf32>
      %22 = vector.broadcast %16 : vector<1x128xf32> to vector<8x128xf32>
      %23 = arith.mulf %22, %19 : vector<8x128xf32>
      %24 = arith.select %21, %19, %23 : vector<8x128xi1>, vector<8x128xf32>
      %c0_15 = arith.constant 0 : index
      %c0_16 = arith.constant 0 : index
      %25 = vector.load %arg7[%c0_15, %c0_16] : memref<8x128xf32, #tpu.memory_space<vmem>>, vector<8x128xf32>
      tpu.vector_store %arg7[%c0_15, %c0_16], %24 {strides = array<i32>} : memref<8x128xf32, #tpu.memory_space<vmem>>, vector<8x128xf32>,
    } else {
    }
    %c0_i32_1 = arith.constant 0 : i32
    %3 = arith.cmpi ne, %arg1, %c0_i32_1 : i32
    %4 = arith.extui %3 : i1 to i32
    %c0_i32_2 = arith.constant 0 : i32
    %5 = arith.cmpi ne, %4, %c0_i32_2 : i32
    scf.if %5 {
      %c0 = arith.constant 0 : index
      %c0_4 = arith.constant 0 : index
      %9 = vector.load %arg7[%c0, %c0_4] : memref<8x128xf32, #tpu.memory_space<vmem>>, vector<8x128xf32>
      %10 = arith.truncf %9 : vector<8x128xf32> to vector<8x128xbf16>
      %c0_5 = arith.constant 0 : index
      %c0_6 = arith.constant 0 : index
      %c0_7 = arith.constant 0 : index
      %11 = vector.load %arg3[%c0_5, %c0_6, %c0_7] : memref<1x128x128xbf16, #tpu.memory_space<vmem>>, vector<1x128x128xbf16>
      %12 = vector.shape_cast %11 : vector<1x128x128xbf16> to vector<128x128xbf16>
      %c0_8 = arith.constant 0 : index
      %c0_9 = arith.constant 0 : index
      %c0_10 = arith.constant 0 : index
      %13 = vector.load %arg4[%c0_8, %c0_9, %c0_10] : memref<1x1x128xf32, #tpu.memory_space<vmem>>, vector<1x1x128xf32>
      %14 = vector.shape_cast %13 : vector<1x1x128xf32> to vector<1x128xf32>
      %c0_11 = arith.constant 0 : index
      %c0_12 = arith.constant 0 : index
      %c0_13 = arith.constant 0 : index
      %15 = vector.load %arg5[%c0_11, %c0_12, %c0_13] : memref<1x1x128xf32, #tpu.memory_space<vmem>>, vector<1x1x128xf32>
      %16 = vector.shape_cast %15 : vector<1x1x128xf32> to vector<1x128xf32>
      %cst = arith.constant dense<0.000000e+00> : vector<8x128xf32>
      %17 = tpu.matmul %10, %12, %cst {dimension_numbers = #tpu.dot_dimension_numbers<[1], [0], [0], [1], [0, 0, 1, 1], [], []>} : vector<8x128xbf16>, vector<128x128xbf16>, vector<8x128xf32> -> vector<8x128xf32>
      %18 = vector.broadcast %14 : vector<1x128xf32> to vector<8x128xf32>
      %19 = arith.addf %17, %18 : vector<8x128xf32>
      %cst_14 = arith.constant 0.000000e+00 : f32
      %20 = vector.broadcast %cst_14 : f32 to vector<8x128xf32>
      %21 = arith.cmpf ogt, %19, %20 : vector<8x128xf32>
      %22 = vector.broadcast %16 : vector<1x128xf32> to vector<8x128xf32>
      %23 = arith.mulf %22, %19 : vector<8x128xf32>
      %24 = arith.select %21, %19, %23 : vector<8x128xi1>, vector<8x128xf32>
      %c0_15 = arith.constant 0 : index
      %c0_16 = arith.constant 0 : index
      %25 = vector.load %arg7[%c0_15, %c0_16] : memref<8x128xf32, #tpu.memory_space<vmem>>, vector<8x128xf32>
      tpu.vector_store %arg7[%c0_15, %c0_16], %24 {strides = array<i32>} : memref<8x128xf32, #tpu.memory_space<vmem>>, vector<8x128xf32>,
    } else {
    }
    %c2_i32 = arith.constant 2 : i32
    %6 = arith.cmpi eq, %arg1, %c2_i32 : i32
    %7 = arith.extui %6 : i1 to i32
    %c0_i32_3 = arith.constant 0 : i32
    %8 = arith.cmpi ne, %7, %c0_i32_3 : i32
    scf.if %8 {
      %c0 = arith.constant 0 : index
      %c0_4 = arith.constant 0 : index
      %9 = vector.load %arg7[%c0, %c0_4] : memref<8x128xf32, #tpu.memory_space<vmem>>, vector<8x128xf32>
      %c0_5 = arith.constant 0 : index
      %c0_6 = arith.constant 0 : index
      %10 = vector.load %arg6[%c0_5, %c0_6] : memref<8x128xf32, #tpu.memory_space<vmem>>, vector<8x128xf32>
      tpu.vector_store %arg6[%c0_5, %c0_6], %9 {strides = array<i32>} : memref<8x128xf32, #tpu.memory_space<vmem>>, vector<8x128xf32>,
    } else {
    }
    return
  }
  func.func @transform_0(%arg0: i32, %arg1: i32) -> (i32, i32) {
    %c0_i32 = arith.constant 0 : i32
    %c0_i32_0 = arith.constant 0 : i32
    return %arg0, %c0_i32 : i32, i32
  }
  func.func @transform_1(%arg0: i32, %arg1: i32) -> (i32, i32, i32) {
    %c0_i32 = arith.constant 0 : i32
    %c0_i32_0 = arith.constant 0 : i32
    %c0_i32_1 = arith.constant 0 : i32
    return %arg1, %c0_i32, %c0_i32_0 : i32, i32, i32
  }
  func.func @transform_2(%arg0: i32, %arg1: i32) -> (i32, i32, i32) {
    %c0_i32 = arith.constant 0 : i32
    %c0_i32_0 = arith.constant 0 : i32
    %c0_i32_1 = arith.constant 0 : i32
    return %arg1, %c0_i32, %c0_i32_0 : i32, i32, i32
  }
  func.func @transform_3(%arg0: i32, %arg1: i32) -> (i32, i32, i32) {
    %c0_i32 = arith.constant 0 : i32
    %c0_i32_0 = arith.constant 0 : i32
    %c0_i32_1 = arith.constant 0 : i32
    return %arg1, %c0_i32, %c0_i32_0 : i32, i32, i32
  }
  func.func @transform_4(%arg0: i32, %arg1: i32) -> (i32, i32) {
    %c0_i32 = arith.constant 0 : i32
    %c0_i32_0 = arith.constant 0 : i32
    return %arg0, %c0_i32 : i32, i32
  }
}

</mosaic_0001>

<bundles_post_ra>
// kernel: _mlp_forward_padded.1
= control target key start
LH: loop header
LB: loop body
LE: loop exit
PB: predicated region body
PF: predicated region fallthrough
CT: control target
= control target key end

     0   :  { %s1158_s0 = inlined_call_operand.hbm [shape: f32[8,32], index: 0, kind: input, shape index: {}]   ;;  %s1159_s1 = inlined_call_operand.hbm [shape: bf16[3,128,128], index: 1, kind: input, shape index: {}]   ;;  %s1160_s2 = inlined_call_operand.hbm [shape: f32[3,1,128], index: 2, kind: input, shape index: {}]   ;;  %s1161_s3 = inlined_call_operand.hbm [shape: f32[3,1,128], index: 3, kind: input, shape index: {}]   ;;  %s1162_s4 = inlined_call_operand.hbm [shape: f32[8,128], index: 4, kind: output, shape index: {}]  }
   0x1   :  { %1163 = sst [smem:[#allocation16_spill]] %s1158_s0 }
   0x2   :  { %9 = vsyncpa [#allocation4], 0 }
   0x3   :  { %10 = vsyncpa [#allocation7], 0 }
   0x4   :  { %12 = vsyncpa [#allocation7 + $0x1], 0 }
   0x5   :  { %13 = vsyncpa [#allocation10], 0 }
   0x6   :  { %15 = vsyncpa [#allocation10 + $0x1], 0 }
   0x7   :  { %16 = vsyncpa [#allocation5], 0  ;;  %s985_s15 = smov 0   ;;  %s987_s16 = smov 0  }
   0x8   :  { %s989_s17 = smov 0   ;;  %s991_s18 = smov 0  }
   0x9   :  { %s993_s19 = smov 0   ;;  %s995_s20 = smov 0  }
   0xa LB: > { %s31_s21 = sadd.s32 1, %s950_s19  ;;  %s67_s22 = sadd.s32 1, %s942_s17  ;;  %s954_s20 = sphi %s995_s20, %s22_s20   ;;  %s950_s19 = sphi %s993_s19, %s1173_s19   ;;  %s946_s18 = sphi %s991_s18, %s1172_s18   ;;  %s942_s17 = sphi %s989_s17, %s1171_s17   ;;  %s938_s16 = sphi %s987_s16, %s1170_s16   ;;  %s934_s15 = sphi %s985_s15, %s1169_s15  }
   0xb   : > { %p32_p0 = scmp.ge.s32.totalorder %s31_s21, 3  ;;  %p74_p1 = scmp.ne.s32.totalorder %s942_s17, %s938_s16 }
   0xc   : > { %p75_p2 = scmp.eq.s32.totalorder %s954_s20, 0  ;;  %p684_p4 = scmp.lt.s32.totalorder %s954_s20, 3 }
   0xd   : > { %s1175_s21 = smov (%p32_p0, %s31_s21), 0  ;;  %s196_s25 = sand.u32 1, %s954_s20  }
   0xe   : > { %p1022_p3 = por %p75_p2, %p74_p1  ;;  %s64_s24 = ssub.s32 %s950_s19, %s1175_s21 }
   0xf   : > { %p65_p5 = scmp.eq.s32.totalorder %s64_s24, 0  ;;  %s1031_s26 = sand.u32 1, %s942_s17  }
  0x10   : > { %s644_s27 = sshll.u32 %s950_s19, 6  ;;  %s590_s29 = sshll.u32 %s1031_s26, 6 }
  0x11   : > { %s1035_s28 = scalar_select %p65_p5, %s942_s17, %s67_s22  }
  0x12   : > { %s205_s6 = scalar_lea.hbm %s1159_s1, %s644_s27  ;;  %s200_s8 = scalar_lea.vmem [#allocation6], %s590_s29 }
  0x13   : > { %s206_s7 = sshll.u32 %s205_s6, 4  ;;  %s208_s9 = sshll.u32 %s200_s8, 4  ;;  %s207_s7 = int_to_ptr.hbm [resolvable:$true] %s206_s7  ;;  %s209_s9 = int_to_ptr.vmem [resolvable:$true] %s208_s9 }
  0x14   : > { %p1045_p6 = pnand %p684_p4, %p1022_p3  ;;  %s197_s11 = scalar_lea.sflag [#allocation7], %s196_s25 }
  0x15   : > { %s956_s12 = smov 64   ;;  %s957_s13 = smov 4  }
  0x16   : > { %676 = dma.hbm_to_vmem [thread:$0]  (!%p1045_p6), %s207_s7, 1024, %s209_s9, %s197_s11, %s956_s12, %s956_s12, %s957_s13  }
  0x17   : > { %s1052_s14 = sadd.s32 4294967295, %s954_s20   ;;  %p80_p7 = scmp.ne.s32.totalorder %s938_s16, %s934_s15 }
  0x18   : > { %p81_p8 = scmp.eq.s32.totalorder %s1052_s14, 0  ;;  %p587_p9 = scmp.ge.s32.totalorder %s954_s20, 1 }
  0x19   : > { %p169_p10 = scmp.lt.s32.totalorder %s954_s20, 4  ;;  %s1168_s0 = sld [smem:[#allocation16_spill]] }
  0x1a   : > { %p1061_p11 = por %p81_p8, %p80_p7  ;;  %s958_s15 = smov [#allocation3]  }
  0x1b   : > { %p1065_p12 = pnand %p587_p9, %p169_p10  ;;  %s185_s29 = sshll.u32 %s958_s15, 4  ;;  %s186_s29 = int_to_ptr.vmem [resolvable:$true] %s185_s29 }
  0x1c   : > { %s224_s6 = scalar_lea.hbm %s1160_s2, %s950_s19  ;;  %s221_s8 = scalar_lea.vmem [#allocation8], %s1031_s26 }
  0x1d   : > { %p669_p13 = pneg %p1065_p12  ;;  %s226_s7 = sshll.u32 %s224_s6, 4  ;;  %s227_s7 = int_to_ptr.hbm [resolvable:$true] %s226_s7 }
  0x1e   : > { %s228_s9 = sshll.u32 %s221_s8, 4  ;;  %s241_s24 = scalar_lea.hbm %s1161_s3, %s950_s19  ;;  %s229_s9 = int_to_ptr.vmem [resolvable:$true] %s228_s9 }
  0x1f   : > { %s183_s27 = sshll.u32 %s1168_s0, 4  ;;  %p670_p0 = pnand %p669_p13, %p81_p8  ;;  %s184_s27 = int_to_ptr.hbm [resolvable:$true] %s183_s27 }
  0x20   : > { %679 = dma.hbm_to_vmem [thread:$0]  (!%p1045_p6), %s227_s7, 16, %s229_s9, %s197_s11  }
  0x21   : > { %672 = dma.hbm_to_vmem [thread:$0]  (!%p670_p0), %s184_s27, 128, %s186_s29, [#allocation4]  }
  0x22   : > { %s243_s25 = sshll.u32 %s241_s24, 4  ;;  %s238_s15 = scalar_lea.vmem [#allocation9], %s1031_s26  ;;  %s244_s25 = int_to_ptr.hbm [resolvable:$true] %s243_s25 }
  0x23   : > { %s245_s0 = sshll.u32 %s238_s15, 4  ;;  %s236_s30 = scalar_lea.sflag [#allocation10], %s1031_s26  ;;  %s246_s0 = int_to_ptr.vmem [resolvable:$true] %s245_s0 }
  0x24   : > { %682 = dma.hbm_to_vmem [thread:$0]  (!%p1045_p6), %s244_s25, 16, %s246_s0, %s236_s30  }
  0x25   : > { %254 = sbr.rel (%p1065_p12) target bundleno = 387 (0x183), region = 36 }
  0x2a   : > { %917 = dma.done.wait (%p81_p8), [#allocation4], 128  }
  0x2b   : > { %919 = vsyncadd (%p81_p8), [#allocation4], 4294967168  ;;  %s261_s11 = sand.u32 1, %s1052_s14   ;;  %s1099_s27 = sand.u32 1, %s938_s16  }
  0x2c   : > { %s595_s29 = sshll.u32 %s1099_s27, 6  ;;  %s262_s26 = scalar_lea.sflag [#allocation7], %s261_s11 }
  0x2d   : > { %s1102_s10 = scalar_lea.vmem [#allocation6], %s595_s29 }
  0x2e   : > { %921 = dma.done.wait (%p1061_p11), %s262_s26, 1040  }
  0x2f   : > { %923 = vsyncadd (%p1061_p11), %s262_s26, 4294966256  ;;  %s274_s0 = scalar_lea.vmem [#allocation8], %s1099_s27  ;;  %s281_s23 = scalar_lea.sflag [#allocation10], %s1099_s27 }
  0x30   : > { %s283_s5 = scalar_lea.vmem [#allocation9], %s1099_s27 }
  0x31   : > { %925 = dma.done.wait (%p1061_p11), %s281_s23, 16  }
  0x32   : > { %927 = vsyncadd (%p1061_p11), %s281_s23, 4294967280  ;;  %p596_p1 = scmp.ne.s32.totalorder %s946_s18, 0 }
  0x34   : > { %316 = sbr.rel (%p596_p1) target bundleno = 199 (0xc7), region = 56 }
  0x39   : > { %v646_v0 = vld [vmem:[%s1102_s10 + $0x8] sm:$0xff]  ;;  %v645_v1 = vld [vmem:[%s1102_s10] sm:$0xff]  ;;  %v317_v2 = vld [vmem:[#allocation3] sm:$0xff]  ;;  %vm340_vm0 = vcmask 261120  }
  0x3a   : > { %350 = vmatpush.bf16.msra.mxu0 %v646_v0  ;;  %v318_v3 = vpack.c.bf16 %v317_v2, %v317_v2  ;;  %v740_v4 = vld [vmem:[%s274_s0] ss:$0 sm:$0xff] }
  0x3b   : > { %v741_v5 = vld [vmem:[%s283_s5] ss:$0 sm:$0xff] }
  0x3e   : > { %351 = vmatpush.bf16.msra.mxu0 %v645_v1 }
  0x41   : > { %605 = vmatmul.msk.bf16.vlgmr.msra.gmra.mxu0 %vm340_vm0, %v318_v3 }
  0xbe   : > { %v353_v6 = vpop.f32.mrf.mxu0 }
  0xbf   : > { %v354_v7 = vadd.f32 %v740_v4, %v353_v6 }
  0xc1   : > { %vm357_vm1 = vcmp.gt.f32.partialorder %v354_v7, 0.0  ;;  %v361_v8 = vmul.f32 %v741_v5, %v354_v7 }
  0xc3   : > { %v362_v9 = vsel %vm357_vm1, %v354_v7, %v361_v8 }
  0xc4   : > { %363 = vst [vmem:[#allocation2] sm:$0xff] %v362_v9 }
  0xc6   : > { %v355_v10 = vpop.f32.mrf.mxu0 }
  0xc7 PF: > { %p606_p2 = scmp.eq.s32.totalorder %s946_s18, 0 }
  0xc9   : > { %367 = sbr.rel (%p606_p2) target bundleno = 372 (0x174), region = 60 }
  0xce   : > { %v654_v11 = vld [vmem:[%s1102_s10 + $0x38] sm:$0xff]  ;;  %v653_v12 = vld [vmem:[%s1102_s10 + $0x30] sm:$0xff]  ;;  %v652_v13 = vld [vmem:[%s1102_s10 + $0x28] sm:$0xff] }
  0xcf   : > { %439 = vmatpush.bf16.msra.mxu0 %v654_v11  ;;  %v651_v14 = vld [vmem:[%s1102_s10 + $0x20] sm:$0xff]  ;;  %v650_v15 = vld [vmem:[%s1102_s10 + $0x18] sm:$0xff]  ;;  %v649_v16 = vld [vmem:[%s1102_s10 + $0x10] sm:$0xff] }
  0xd0   : > { %v648_v17 = vld [vmem:[%s1102_s10 + $0x8] sm:$0xff]  ;;  %v647_v18 = vld [vmem:[%s1102_s10] sm:$0xff]  ;;  %v368_v19 = vld [vmem:[#allocation2] sm:$0xff] }
  0xd1   : > { %v369_v20 = vpack.c.bf16 %v368_v19, %v368_v19  ;;  %v742_v21 = vld [vmem:[%s274_s0] ss:$0 sm:$0xff] }
  0xd2   : > { %v743_v22 = vld [vmem:[%s283_s5] ss:$0 sm:$0xff] }
  0xd3   : > { %440 = vmatpush.bf16.msra.mxu0 %v653_v12 }
  0xd7   : > { %441 = vmatpush.bf16.msra.mxu0 %v652_v13 }
  0xdb   : > { %442 = vmatpush.bf16.msra.mxu0 %v651_v14 }
  0xdf   : > { %443 = vmatpush.bf16.msra.mxu0 %v650_v15 }
  0xe3   : > { %444 = vmatpush.bf16.msra.mxu0 %v649_v16 }
  0xe7   : > { %445 = vmatpush.bf16.msra.mxu0 %v648_v17 }
  0xeb   : > { %446 = vmatpush.bf16.msra.mxu0 %v647_v18 }
  0xee   : > { %447 = vmatmul.bf16.vlgmr.msra.gmra.mxu0 %v369_v20 }
 0x16b   : > { %v448_v23 = vpop.f32.mrf.mxu0 }
 0x16c   : > { %v449_v24 = vadd.f32 %v742_v21, %v448_v23 }
 0x16e   : > { %vm452_vm2 = vcmp.gt.f32.partialorder %v449_v24, 0.0  ;;  %v456_v25 = vmul.f32 %v743_v22, %v449_v24 }
 0x170   : > { %v457_v26 = vsel %vm452_vm2, %v449_v24, %v456_v25 }
 0x171   : > { %458 = vst [vmem:[#allocation2] sm:$0xff] %v457_v26 }
 0x173   : > { %v450_v27 = vpop.f32.mrf.mxu0 }
 0x174 PF: > { %p639_p3 = scmp.ne.s32.totalorder %s946_s18, 2 }
 0x176   : > { %462 = sbr.rel (%p639_p3) target bundleno = 381 (0x17d), region = 64 }
 0x17b   : > { %v463_v28 = vld [vmem:[#allocation2] sm:$0xff] }
 0x17c   : > { %464 = vst [vmem:[#allocation11] sm:$0xff] %v463_v28 }
 0x17d PF: > { %p686_p4 = scmp.eq.s32.totalorder %s1052_s14, 2  ;;  %s475_s7 = sshll.u32 %s1162_s4, 4  ;;  %s476_s7 = int_to_ptr.hbm [resolvable:$true] %s475_s7 }
 0x17e   : > { %s959_s8 = smov [#allocation11]  }
 0x17f   : > { %s473_s9 = sshll.u32 %s959_s8, 4  ;;  %s474_s9 = int_to_ptr.vmem [resolvable:$true] %s473_s9 }
 0x180   : > { %666 = dma.vmem_to_hbm [thread:$0]  (%p686_p4), %s474_s9, 128, %s476_s7, [#allocation5]  }
 0x181   : > { %929 = dma.done.wait (%p686_p4), [#allocation5], 128  }
 0x182   : > { %931 = vsyncadd (%p686_p4), [#allocation5], 4294967168 }
 0x183 PF: > { %s22_s20 = sadd.s32 1, %s954_s20   ;;  %s1169_s15 = smov %s938_s16 }
 0x184   : > { %p19_p5 = scmp.ge.s32.totalorder %s22_s20, 5   ;;  %s1170_s16 = smov %s942_s17 }
 0x185   : > { %s1171_s17 = smov %s1035_s28  ;;  %s1172_s18 = smov %s950_s19 }
 0x186   : > { %s1173_s19 = smov %s1175_s21  ;;  %21 = sbr.rel (!%p19_p5) target bundleno = 10 (0xa), region = 116 }
 0x18b   :  { %489 = vsyncpa [#allocation4], 1 }
 0x18c   :  { %491 = vsyncpa [#allocation4 + $0x1], 1 }
 0x18d   :  { %492 = vsyncpa [#allocation7], 1 }
 0x18e   :  { %494 = vsyncpa [#allocation7 + $0x1], 1 }
 0x18f   :  { %495 = vsyncpa [#allocation10], 1 }
 0x190   :  { %497 = vsyncpa [#allocation10 + $0x1], 1 }
 0x191   :  { %498 = vsyncpa [#allocation5], 1 }
 0x192   :  { %500 = vsyncpa [#allocation5 + $0x1], 1 }

</bundles_post_ra>
